<compile_context>
chip_gen: v5e
topology: v5e:2x2
jax: 0.10.0
libtpu: 0.0.40
codegen_flags: <defaults>
</compile_context>

<pallas_src>
import jax
import jax.numpy as jnp
from jax import lax
from jax.experimental import pallas as pl
from jax.experimental.pallas import tpu as pltpu


def _linear_clamp_sigmoid_kernel(x_ref, wt_ref, b_ref, o_ref):
    # x_ref: (B, F)   wt_ref: (F, O) (pre-transposed)   b_ref: (1, O)
    # o_ref: (B, O)
    # x @ W^T done as x @ wt with wt = W^T already materialized outside the
    # kernel: straight (1,)x(0,) contraction, MXU-friendly, no relayout.
    v = lax.dot_general(
        x_ref[...], wt_ref[...],
        dimension_numbers=(((1,), (0,)), ((), ())),
        preferred_element_type=jnp.float32,
    )
    v = v + b_ref[...]            # (B, O) + (1, O): sublane-broadcast add
    v = jnp.maximum(v, 0.0)       # clamp_min(0)
    v = jnp.minimum(v, 255.0)     # clamp_max(255)
    # sigmoid(v) = 1 / (1 + exp(-v)); exp and the approximate reciprocal both
    # run on the EUP.  approx reciprocal costs ~1e-4..1e-3 rel error, fine for
    # this activation (test tolerance covers it).
    o_ref[...] = pl.reciprocal(1.0 + jnp.exp(-v), approx=True).astype(o_ref.dtype)


def linear_clamp_sigmoid(x_flat, weight, bias):
    """x_flat: (B, F) f32; weight: (O, F) f32 (PyTorch layout); bias: (O,) f32."""
    B, F = x_flat.shape
    O = weight.shape[0]

    # Host/trace-time layout prep (folded by XLA for static params; a single
    # tiny transpose+reshape otherwise): weight -> (F, O), bias -> (1, O).
    wt = jnp.transpose(weight).astype(jnp.float32)          # (F, O)
    b2 = bias.reshape(1, O).astype(jnp.float32)              # (1, O)

    vmem = pl.BlockSpec(memory_space=pltpu.MemorySpace.VMEM)

    # Advisory cost hint: ~2*B*F*O flops, 2 transcendentals per output elem,
    # and all operand/result bytes touched once.
    cost = pl.CostEstimate(
        flops=2 * B * F * O,
        transcendentals=2 * B * O,
        bytes_accessed=4 * (B * F + F * O + O + B * O),
    )

    # Single invocation, no grid: the whole problem fits in a tiny corner of
    # VMEM / one MXU pass, so any grid machinery is pure overhead.
    return pl.pallas_call(
        _linear_clamp_sigmoid_kernel,
        out_shape=jax.ShapeDtypeStruct((B, O), jnp.float32),
        in_specs=[vmem, vmem, vmem],
        out_specs=vmem,
        cost_estimate=cost,
    )(x_flat, wt, b2)


def model_forward(x1, weight, bias):
    # flatten(x1, 1): (32, 4, 2, 2) -> (32, 16)   (plain-JAX glue, metadata only)
    B = x1.shape[0]
    x_flat = x1.reshape(B, -1).astype(jnp.float32)
    v = linear_clamp_sigmoid(x_flat, weight, bias)   # fused linear+clamp+sigmoid
    # reshape(1, 16, 8, 8); sigmoid is elementwise so applying it pre-reshape
    # inside the kernel is equivalent.
    return v.reshape(1, 16, 8, 8)


if __name__ == "__main__":
    key = jax.random.PRNGKey(0)
    k_x, k_w, k_b = jax.random.split(key, 3)

    # Input consistent with the forward pass: (B=32, C=4, H=2, W=2) -> 16 features.
    x1 = jax.random.normal(k_x, (32, 4, 2, 2), dtype=jnp.float32)

    # Deterministic Linear(16, 32) parameters (PyTorch weight layout: (out, in)).
    in_features, out_features = 16, 32
    bound = 1.0 / (in_features ** 0.5)
    weight = jax.random.uniform(
        k_w, (out_features, in_features), minval=-bound, maxval=bound,
        dtype=jnp.float32)
    bias = jax.random.uniform(
        k_b, (out_features,), minval=-bound, maxval=bound, dtype=jnp.float32)

    out = model_forward(x1, weight, bias)
    jax.block_until_ready(out)

    # Sanity check against a pure-JAX reference (exact sigmoid).  Tolerance is
    # loosened slightly to cover the EUP approximate-reciprocal path.
    ref = jax.nn.sigmoid(
        jnp.clip(x1.reshape(32, 16) @ weight.T + bias, 0.0, 255.0)
    ).reshape(1, 16, 8, 8)
    assert out.shape == (1, 16, 8, 8)
    assert jnp.allclose(out, ref, atol=2e-3, rtol=2e-3)

    print("KERNEL_OK")
</pallas_src>

<mosaic_0001>
module attributes {stable_mosaic.version = 11 : i64} {
  func.func @_linear_clamp_sigmoid_kernel(%arg0: memref<32x16xf32, #tpu.memory_space<vmem>>, %arg1: memref<16x32xf32, #tpu.memory_space<vmem>>, %arg2: memref<1x32xf32, #tpu.memory_space<vmem>>, %arg3: memref<32x32xf32, #tpu.memory_space<vmem>>) attributes {dimension_semantics = [], scalar_prefetch = 0 : i64, scratch_operands = 0 : i64, tpu.core_type = #tpu.core_type<tc>} {
    %c0 = arith.constant 0 : index
    %c0_0 = arith.constant 0 : index
    %0 = vector.load %arg0[%c0, %c0_0] : memref<32x16xf32, #tpu.memory_space<vmem>>, vector<32x16xf32>
    %c0_1 = arith.constant 0 : index
    %c0_2 = arith.constant 0 : index
    %1 = vector.load %arg1[%c0_1, %c0_2] : memref<16x32xf32, #tpu.memory_space<vmem>>, vector<16x32xf32>
    %cst = arith.constant dense<0.000000e+00> : vector<32x32xf32>
    %2 = tpu.matmul %0, %1, %cst {dimension_numbers = #tpu.dot_dimension_numbers<[1], [0], [0], [1], [0, 0, 1, 1], [], []>} : vector<32x16xf32>, vector<16x32xf32>, vector<32x32xf32> -> vector<32x32xf32>
    %c0_3 = arith.constant 0 : index
    %c0_4 = arith.constant 0 : index
    %3 = vector.load %arg2[%c0_3, %c0_4] : memref<1x32xf32, #tpu.memory_space<vmem>>, vector<1x32xf32>
    %4 = vector.broadcast %3 : vector<1x32xf32> to vector<32x32xf32>
    %5 = arith.addf %2, %4 : vector<32x32xf32>
    %cst_5 = arith.constant 0.000000e+00 : f32
    %6 = vector.broadcast %cst_5 : f32 to vector<32x32xf32>
    %7 = arith.maximumf %5, %6 : vector<32x32xf32>
    %cst_6 = arith.constant 2.550000e+02 : f32
    %8 = vector.broadcast %cst_6 : f32 to vector<32x32xf32>
    %9 = arith.minimumf %7, %8 : vector<32x32xf32>
    %cst_7 = arith.constant 0.000000e+00 : f32
    %10 = vector.broadcast %cst_7 : f32 to vector<32x32xf32>
    %11 = arith.subf %10, %9 : vector<32x32xf32>
    %12 = math.exp %11 : vector<32x32xf32>
    %cst_8 = arith.constant 1.000000e+00 : f32
    %13 = vector.broadcast %cst_8 : f32 to vector<32x32xf32>
    %14 = arith.addf %13, %12 : vector<32x32xf32>
    %15 = tpu.reciprocal %14 {approx = true} : vector<32x32xf32> -> vector<32x32xf32>
    %c0_9 = arith.constant 0 : index
    %c0_10 = arith.constant 0 : index
    %16 = vector.load %arg3[%c0_9, %c0_10] : memref<32x32xf32, #tpu.memory_space<vmem>>, vector<32x32xf32>
    tpu.vector_store %arg3[%c0_9, %c0_10], %15 {strides = array<i32>} : memref<32x32xf32, #tpu.memory_space<vmem>>, vector<32x32xf32>,
    return
  }
}

</mosaic_0001>

<bundles_post_ra>
// kernel: tpu_custom_call.1
= control target key start
LH: loop header
LB: loop body
LE: loop exit
PB: predicated region body
PF: predicated region fallthrough
CT: control target
= control target key end

     0   :  { %vm25_vm0 = vcmask 130048   ;;  %s221_s0 = inlined_call_operand.vmem [shape: f32[32,16], index: 0, kind: input, shape index: {}]   ;;  %s222_s1 = inlined_call_operand.vmem [shape: f32[16,32], index: 1, kind: input, shape index: {}]   ;;  %s223_s2 = inlined_call_operand.vmem [shape: f32[1,32], index: 2, kind: input, shape index: {}]   ;;  %s224_s3 = inlined_call_operand.hbm [shape: f32[32,32], index: 3, kind: output, shape index: {}]  }
   0x1   :  { %v20_v0 = vld [vmem:[%s222_s1 + $0x8] sm:$0xff]  ;;  %v19_v1 = vld [vmem:[%s222_s1] sm:$0xff]  ;;  %v17_v2 = vld [vmem:[%s221_s0 + $0x10] sm:$0xff] }
   0x2   :  { %123 = vmatpush.msra.mxu2 %v20_v0  ;;  %124 = vmatpush.msra.mxu3 %v20_v0  ;;  %v18_v3 = vld [vmem:[%s221_s0 + $0x18] sm:$0xff] }
   0x3   :  { %52 = vmatpush.msra.mxu0 %v20_v0  ;;  %122 = vmatpush.msra.mxu1 %v20_v0 }
   0x4   :  { %8 = vsyncpa [#allocation3], 0  ;;  %126 = vmatpush.msra.mxu2 %v19_v1  ;;  %127 = vmatpush.msra.mxu3 %v19_v1  ;;  %v15_v4 = vld [vmem:[%s221_s0] sm:$0xff]  ;;  %v16_v5 = vld [vmem:[%s221_s0 + $0x8] sm:$0xff]  ;;  %vm95_vm1 = vcmask 261120   ;;  %s174_s0 = smov [#allocation2]  }
   0x5   :  { %120 = vmatmul.msk.f32.vlgmr.msra.gmra.mxu2 %vm25_vm0, %v17_v2  ;;  %121 = vmatmul.msk.f32.vlgmr.msra.gmra.mxu3 %vm25_vm0, %v18_v3  ;;  %v131_v6 = vld [vmem:[%s223_s2] ss:$0 sm:$0xff]  ;;  %s104_s2 = sshll.u32 %s174_s0, 4  ;;  %s106_s27 = sshll.u32 %s224_s3, 4  ;;  %s105_s2 = int_to_ptr.vmem [resolvable:$true] %s104_s2  ;;  %s107_s27 = int_to_ptr.hbm [resolvable:$true] %s106_s27 }
   0x6   :  { %53 = vmatpush.msra.mxu0 %v19_v1  ;;  %125 = vmatpush.msra.mxu1 %v19_v1  ;;  %s175_s28 = smov 128   ;;  %s176_s29 = smov 8  }
   0x7   :  { %118 = vmatmul.msk.f32.vlgmr.msra.gmra.mxu0 %vm25_vm0, %v15_v4  ;;  %119 = vmatmul.msk.f32.vlgmr.msra.gmra.mxu1 %vm25_vm0, %v16_v5 }
  0x84   :  { %v55_v7 = vpop.f32.mrf.mxu0  ;;  %v58_v8 = vpop.f32.mrf.mxu1 }
  0x85   :  { %v56_v9 = vadd.f32 %v131_v6, %v55_v7  ;;  %v59_v10 = vadd.f32 %v131_v6, %v58_v8 }
  0x87   :  { %v67_v11 = vmax.f32 %v56_v9, 0.0  ;;  %v68_v12 = vmax.f32 %v59_v10, 0.0 }
  0x88   :  { %v61_v13 = vpop.f32.mrf.mxu2  ;;  %v64_v14 = vpop.f32.mrf.mxu3 }
  0x89   :  { %v71_v15 = vmin.f32 %v67_v11, 255.0  ;;  %v72_v16 = vmin.f32 %v68_v12, 255.0  ;;  %v62_v17 = vadd.f32 %v131_v6, %v61_v13  ;;  %v65_v18 = vadd.f32 %v131_v6, %v64_v14 }
  0x8b   :  { %v75_v19 = vsub.f32 0.0, %v71_v15  ;;  %v76_v20 = vsub.f32 0.0, %v72_v16  ;;  %v69_v21 = vmax.f32 %v62_v17, 0.0  ;;  %v70_v22 = vmax.f32 %v65_v18, 0.0 }
  0x8d   :  { %v79_v23 = vmul.f32 1.442695, %v75_v19  ;;  %v81_v24 = vmul.f32 1.442695, %v76_v20  ;;  %v73_v25 = vmin.f32 %v69_v21, 255.0  ;;  %v74_v26 = vmin.f32 %v70_v22, 255.0 }
  0x8f   :  { %132 = vpow2.f32 %v79_v23  ;;  %v77_v27 = vsub.f32 0.0, %v73_v25  ;;  %v78_v28 = vsub.f32 0.0, %v74_v26 }
  0x90   :  { %134 = vpow2.f32 %v81_v24 }
  0x91   :  { %v83_v29 = vmul.f32 1.442695, %v77_v27  ;;  %v85_v30 = vmul.f32 1.442695, %v78_v28 }
  0x93   :  { %136 = vpow2.f32 %v83_v29 }
  0x94   :  { %138 = vpow2.f32 %v85_v30 }
  0x95   :  { %v133_v31 = vpop.eup %132 }
  0x96   :  { %v135_v32 = vpop.eup %134  ;;  %v87_v33 = vadd.f32 1.0, %v133_v31 }
  0x97   :  { %v88_v34 = vadd.f32 1.0, %v135_v32 }
  0x98   :  { %140 = vrcp.f32 %v87_v33 }
  0x99   :  { %v137_v35 = vpop.eup %136  ;;  %142 = vrcp.f32 %v88_v34 }
  0x9a   :  { %v139_v36 = vpop.eup %138  ;;  %v89_v37 = vadd.f32 1.0, %v137_v35 }
  0x9b   :  { %v90_v38 = vadd.f32 1.0, %v139_v36 }
  0x9c   :  { %144 = vrcp.f32 %v89_v37 }
  0x9d   :  { %146 = vrcp.f32 %v90_v38 }
  0x9e   :  { %v141_v39 = vpop.eup %140 }
  0x9f   :  { %v143_v40 = vpop.eup %142  ;;  %96 = vst.msk [vmem:[#allocation2] sm:$0xff] %vm95_vm1, %v141_v39 }
  0xa0   :  { %97 = vst.msk [vmem:[#allocation2 + $0x8] sm:$0xff] %vm95_vm1, %v143_v40 }
  0xa2   :  { %v145_v41 = vpop.eup %144 }
  0xa3   :  { %v147_v42 = vpop.eup %146  ;;  %98 = vst.msk [vmem:[#allocation2 + $0x10] sm:$0xff] %vm95_vm1, %v145_v41 }
  0xa4   :  { %99 = vst.msk [vmem:[#allocation2 + $0x18] sm:$0xff] %vm95_vm1, %v147_v42 }
  0xa5   :  { %112 = dma.vmem_to_hbm [thread:$0]  %s105_s2, 512, %s107_s27, [#allocation3], %s175_s28, %s175_s28, %s176_s29  }
  0xa6   :  { %172 = dma.done.wait [#allocation3], 512  }
  0xa7   :  { %173 = vsyncadd [#allocation3], 4294966784 }
  0xa8   :  { %117 = vsyncpa [#allocation3], 1 }

</bundles_post_ra>
